<compile_context>
chip_gen: v5e
topology: v5e:2x2
jax: 0.10.0
libtpu: 0.0.40
codegen_flags: <defaults>
</compile_context>

<pallas_src>
import functools
import math

import jax
import jax.numpy as jnp
from jax.experimental import pallas as pl
from jax.experimental.pallas import tpu as pltpu


def attention_kernel(x_ref, m_ref, wqkv_ref, bqkv_ref, o_ref,
                     *, batch, tq, tk, hidden):
    """One grid step = one block of batch elements; everything fits in VMEM."""
    H = hidden
    x2d = x_ref[...]                      # (batch*tq, H)  flattened text rows
    m2d = m_ref[...]                      # (batch*tk, H)  flattened meta rows
    wqkv = wqkv_ref[...]                  # (H, 3H) = [Wq | Wk | Wv]
    bqkv = bqkv_ref[...]                  # (1, 3H) = [bq | bk | bv]

    # ---- fused projections: 2 GEMMs total (f32 accumulation on the MXU). ----
    q = (jnp.dot(x2d, wqkv[:, :H], preferred_element_type=jnp.float32)
         + bqkv[:, :H])                                       # (batch*tq, H)
    kv = (jnp.dot(m2d, wqkv[:, H:], preferred_element_type=jnp.float32)
          + bqkv[:, H:])                                      # (batch*tk, 2H)
    k = kv[:, :H]
    v = kv[:, H:]

    # Value reshapes for the batched contractions; relayout-free when T % 8 == 0.
    q3 = q.reshape(batch, tq, H)
    k3 = k.reshape(batch, tk, H)
    v3 = v.reshape(batch, tk, H)

    # ---- scores = Q @ K^T / sqrt(H); transpose folded into dot_general. ----
    scale = 1.0 / math.sqrt(H)
    s = jnp.einsum('bqd,bkd->bqk', q3, k3,
                   preferred_element_type=jnp.float32) * scale

    # ---- numerically stable softmax over the key axis (exact divide). ----
    s = s - jnp.max(s, axis=-1, keepdims=True)
    p = jnp.exp(s)
    attn = p / jnp.sum(p, axis=-1, keepdims=True)

    # ---- attention output = attn @ V (batched), stored as one 2D slab. ----
    out = jnp.einsum('bqk,bkd->bqd', attn, v3,
                     preferred_element_type=jnp.float32)
    o_ref[...] = out.reshape(batch * tq, H).astype(o_ref.dtype)


def attention_pallas(text, meta, wqkv, bqkv, batch_block=None):
    """text: (B, Tq, H), meta: (B, Tk, H); wqkv: (H, 3H), bqkv: (1, 3H)."""
    B, Tq, H = text.shape
    Bm, Tk, Hm = meta.shape
    assert (Bm, Hm) == (B, H), (text.shape, meta.shape)
    assert wqkv.shape == (H, 3 * H) and bqkv.shape == (1, 3 * H)

    if batch_block is None:
        # Whole batch in one grid step at small sizes; on v7x use B//2 once the
        # per-step compute exceeds the ~0.35us step overhead + duplicated
        # weight DMA.
        batch_block = B
    assert B % batch_block == 0, (B, batch_block)

    # Wrapper-side layout plumbing: 2D slabs in, 2D slab out.
    x2d = text.reshape(B * Tq, H)
    m2d = meta.reshape(B * Tk, H)

    grid = (B // batch_block,)
    kernel = functools.partial(attention_kernel,
                               batch=batch_block, tq=Tq, tk=Tk, hidden=H)

    out2d = pl.pallas_call(
        kernel,
        out_shape=jax.ShapeDtypeStruct((B * Tq, H), text.dtype),
        grid_spec=pltpu.PrefetchScalarGridSpec(
            num_scalar_prefetch=0,
            grid=grid,
            in_specs=[
                pl.BlockSpec((batch_block * Tq, H), lambda b: (b, 0)),  # text rows
                pl.BlockSpec((batch_block * Tk, H), lambda b: (b, 0)),  # meta rows
                pl.BlockSpec((H, 3 * H), lambda b: (0, 0)),             # fused W
                pl.BlockSpec((1, 3 * H), lambda b: (0, 0)),             # fused b
            ],
            out_specs=pl.BlockSpec((batch_block * Tq, H), lambda b: (b, 0)),
        ),
        compiler_params=pltpu.CompilerParams(
            dimension_semantics=("parallel",)),
    )(x2d, m2d, wqkv, bqkv)

    return out2d.reshape(B, Tq, H)


def attention_ref(text, meta, params):
    """Plain-JAX reference matching the PyTorch forward (f32-exact matmuls)."""
    H = text.shape[-1]
    hp = jax.lax.Precision.HIGHEST
    q = jnp.einsum('btd,dh->bth', text, params["wq"], precision=hp) + params["bq"]
    k = jnp.einsum('btd,dh->bth', meta, params["wk"], precision=hp) + params["bk"]
    v = jnp.einsum('btd,dh->bth', meta, params["wv"], precision=hp) + params["bv"]
    scores = jnp.einsum('bqd,bkd->bqk', q, k, precision=hp) / jnp.sqrt(jnp.float32(H))
    attn = jax.nn.softmax(scores, axis=-1)
    return jnp.einsum('bqk,bkd->bqd', attn, v, precision=hp)


def init_params(key, hidden_size):
    """Deterministic init mimicking nn.Linear's U(-1/sqrt(H), 1/sqrt(H))."""
    bound = 1.0 / jnp.sqrt(jnp.float32(hidden_size))
    keys = jax.random.split(key, 6)

    def u(k, shape):
        return jax.random.uniform(k, shape, jnp.float32, -bound, bound)

    return {
        "wq": u(keys[0], (hidden_size, hidden_size)),
        "bq": u(keys[1], (1, hidden_size)),
        "wk": u(keys[2], (hidden_size, hidden_size)),
        "bk": u(keys[3], (1, hidden_size)),
        "wv": u(keys[4], (hidden_size, hidden_size)),
        "bv": u(keys[5], (1, hidden_size)),
    }


def fuse_qkv_params(params):
    """One-time weight fusion: [Wq|Wk|Wv] -> (H, 3H), [bq|bk|bv] -> (1, 3H)."""
    wqkv = jnp.concatenate([params["wq"], params["wk"], params["wv"]], axis=1)
    bqkv = jnp.concatenate([params["bq"], params["bk"], params["bv"]], axis=1)
    return wqkv, bqkv


if __name__ == "__main__":
    B, Tq, Tk, H = 2, 8, 8, 32
    key = jax.random.PRNGKey(0)
    k_text, k_meta, k_params = jax.random.split(key, 3)

    text = jax.random.normal(k_text, (B, Tq, H), jnp.float32)
    meta = jax.random.normal(k_meta, (B, Tk, H), jnp.float32)
    params = init_params(k_params, H)
    wqkv, bqkv = fuse_qkv_params(params)   # done once, outside the hot path

    out = attention_pallas(text, meta, wqkv, bqkv)
    out = jax.block_until_ready(out)

    ref = attention_ref(text, meta, params)
    assert out.shape == (B, Tq, H), out.shape
    # Exact softmax divide restored -> f32-level agreement with the reference
    # (small slack for MXU pass / reduction-order differences).
    err = float(jnp.max(jnp.abs(out - ref)))
    assert jnp.allclose(out, ref, atol=1e-5, rtol=1e-4), err
    print("KERNEL_OK")
</pallas_src>

<mosaic_0001>
module attributes {stable_mosaic.version = 11 : i64} {
  func.func @attention_kernel(%arg0: i32, %arg1: memref<16x32xf32, #tpu.memory_space<vmem>>, %arg2: memref<16x32xf32, #tpu.memory_space<vmem>>, %arg3: memref<32x96xf32, #tpu.memory_space<vmem>>, %arg4: memref<1x96xf32, #tpu.memory_space<vmem>>, %arg5: memref<16x32xf32, #tpu.memory_space<vmem>>) attributes {dimension_semantics = [#tpu.dimension_semantics<parallel>], iteration_bounds = array<i64: 1>, scalar_prefetch = 0 : i64, scratch_operands = 0 : i64, tpu.core_type = #tpu.core_type<tc>, window_params = [{transform_indices = @transform_0, window_bounds = array<i64: 16, 32>}, {transform_indices = @transform_1, window_bounds = array<i64: 16, 32>}, {pipeline_mode = #tpu.pipeline_mode<synchronous>, transform_indices = @transform_2, window_bounds = array<i64: 32, 96>}, {pipeline_mode = #tpu.pipeline_mode<synchronous>, transform_indices = @transform_3, window_bounds = array<i64: 1, 96>}, {transform_indices = @transform_4, window_bounds = array<i64: 16, 32>}]} {
    %c0 = arith.constant 0 : index
    %c0_0 = arith.constant 0 : index
    %0 = vector.load %arg1[%c0, %c0_0] : memref<16x32xf32, #tpu.memory_space<vmem>>, vector<16x32xf32>
    %c0_1 = arith.constant 0 : index
    %c0_2 = arith.constant 0 : index
    %1 = vector.load %arg2[%c0_1, %c0_2] : memref<16x32xf32, #tpu.memory_space<vmem>>, vector<16x32xf32>
    %c0_3 = arith.constant 0 : index
    %c0_4 = arith.constant 0 : index
    %2 = vector.load %arg3[%c0_3, %c0_4] : memref<32x96xf32, #tpu.memory_space<vmem>>, vector<32x96xf32>
    %c0_5 = arith.constant 0 : index
    %c0_6 = arith.constant 0 : index
    %3 = vector.load %arg4[%c0_5, %c0_6] : memref<1x96xf32, #tpu.memory_space<vmem>>, vector<1x96xf32>
    %4 = vector.extract_strided_slice %2 {offsets = [0, 0], sizes = [32, 32], strides = [1, 1]} : vector<32x96xf32> to vector<32x32xf32>
    %cst = arith.constant dense<0.000000e+00> : vector<16x32xf32>
    %5 = tpu.matmul %0, %4, %cst {dimension_numbers = #tpu.dot_dimension_numbers<[1], [0], [0], [1], [0, 0, 1, 1], [], []>} : vector<16x32xf32>, vector<32x32xf32>, vector<16x32xf32> -> vector<16x32xf32>
    %6 = vector.extract_strided_slice %3 {offsets = [0, 0], sizes = [1, 32], strides = [1, 1]} : vector<1x96xf32> to vector<1x32xf32>
    %7 = vector.broadcast %6 : vector<1x32xf32> to vector<16x32xf32>
    %8 = arith.addf %5, %7 : vector<16x32xf32>
    %9 = vector.extract_strided_slice %2 {offsets = [0, 32], sizes = [32, 64], strides = [1, 1]} : vector<32x96xf32> to vector<32x64xf32>
    %cst_7 = arith.constant dense<0.000000e+00> : vector<16x64xf32>
    %10 = tpu.matmul %1, %9, %cst_7 {dimension_numbers = #tpu.dot_dimension_numbers<[1], [0], [0], [1], [0, 0, 1, 1], [], []>} : vector<16x32xf32>, vector<32x64xf32>, vector<16x64xf32> -> vector<16x64xf32>
    %11 = vector.extract_strided_slice %3 {offsets = [0, 32], sizes = [1, 64], strides = [1, 1]} : vector<1x96xf32> to vector<1x64xf32>
    %12 = vector.broadcast %11 : vector<1x64xf32> to vector<16x64xf32>
    %13 = arith.addf %10, %12 : vector<16x64xf32>
    %14 = vector.extract_strided_slice %13 {offsets = [0, 0], sizes = [16, 32], strides = [1, 1]} : vector<16x64xf32> to vector<16x32xf32>
    %15 = vector.extract_strided_slice %13 {offsets = [0, 32], sizes = [16, 32], strides = [1, 1]} : vector<16x64xf32> to vector<16x32xf32>
    %16 = vector.shape_cast %8 : vector<16x32xf32> to vector<2x8x32xf32>
    %17 = vector.shape_cast %14 : vector<16x32xf32> to vector<2x8x32xf32>
    %18 = vector.shape_cast %15 : vector<16x32xf32> to vector<2x8x32xf32>
    "tpu.trace_start"() <{level = 10 : i32, message = "bqd,bkd->bqk"}> : () -> ()
    %cst_8 = arith.constant dense<0.000000e+00> : vector<2x8x8xf32>
    %19 = tpu.matmul %16, %17, %cst_8 {dimension_numbers = #tpu.dot_dimension_numbers<[2], [2], [1], [1], [0, 0, 0, 1, 1, 1], [0], [0]>} : vector<2x8x32xf32>, vector<2x8x32xf32>, vector<2x8x8xf32> -> vector<2x8x8xf32>
    "tpu.trace_stop"() : () -> ()
    %cst_9 = arith.constant 0.176776692 : f32
    %20 = vector.broadcast %cst_9 : f32 to vector<2x8x8xf32>
    %21 = arith.mulf %19, %20 : vector<2x8x8xf32>
    %cst_10 = arith.constant dense<0xFF800000> : vector<2x8xf32>
    %22 = vector.multi_reduction <maximumf>, %21, %cst_10 [2] : vector<2x8x8xf32> to vector<2x8xf32>
    %23 = vector.shape_cast %22 : vector<2x8xf32> to vector<2x8x1xf32>
    %24 = vector.broadcast %23 : vector<2x8x1xf32> to vector<2x8x8xf32>
    %25 = arith.subf %21, %24 : vector<2x8x8xf32>
    %26 = math.exp %25 : vector<2x8x8xf32>
    %cst_11 = arith.constant dense<0.000000e+00> : vector<2x8xf32>
    %27 = vector.multi_reduction <add>, %26, %cst_11 [2] : vector<2x8x8xf32> to vector<2x8xf32>
    %28 = vector.shape_cast %27 : vector<2x8xf32> to vector<2x8x1xf32>
    %29 = vector.broadcast %28 : vector<2x8x1xf32> to vector<2x8x8xf32>
    %30 = arith.divf %26, %29 : vector<2x8x8xf32>
    "tpu.trace_start"() <{level = 10 : i32, message = "bqk,bkd->bqd"}> : () -> ()
    %cst_12 = arith.constant dense<0.000000e+00> : vector<2x8x32xf32>
    %31 = tpu.matmul %30, %18, %cst_12 {dimension_numbers = #tpu.dot_dimension_numbers<[2], [1], [1], [2], [0, 0, 0, 1, 1, 2], [0], [0]>} : vector<2x8x8xf32>, vector<2x8x32xf32>, vector<2x8x32xf32> -> vector<2x8x32xf32>
    "tpu.trace_stop"() : () -> ()
    %32 = vector.shape_cast %31 : vector<2x8x32xf32> to vector<16x32xf32>
    %c0_13 = arith.constant 0 : index
    %c0_14 = arith.constant 0 : index
    %33 = vector.load %arg5[%c0_13, %c0_14] : memref<16x32xf32, #tpu.memory_space<vmem>>, vector<16x32xf32>
    tpu.vector_store %arg5[%c0_13, %c0_14], %32 {strides = array<i32>} : memref<16x32xf32, #tpu.memory_space<vmem>>, vector<16x32xf32>,
    return
  }
  func.func @transform_0(%arg0: i32) -> (i32, i32) {
    %c0_i32 = arith.constant 0 : i32
    %c0_i32_0 = arith.constant 0 : i32
    return %arg0, %c0_i32 : i32, i32
  }
  func.func @transform_1(%arg0: i32) -> (i32, i32) {
    %c0_i32 = arith.constant 0 : i32
    %c0_i32_0 = arith.constant 0 : i32
    return %arg0, %c0_i32 : i32, i32
  }
  func.func @transform_2(%arg0: i32) -> (i32, i32) {
    %c0_i32 = arith.constant 0 : i32
    %c0_i32_0 = arith.constant 0 : i32
    %c0_i32_1 = arith.constant 0 : i32
    return %c0_i32, %c0_i32_0 : i32, i32
  }
  func.func @transform_3(%arg0: i32) -> (i32, i32) {
    %c0_i32 = arith.constant 0 : i32
    %c0_i32_0 = arith.constant 0 : i32
    %c0_i32_1 = arith.constant 0 : i32
    return %c0_i32, %c0_i32_0 : i32, i32
  }
  func.func @transform_4(%arg0: i32) -> (i32, i32) {
    %c0_i32 = arith.constant 0 : i32
    %c0_i32_0 = arith.constant 0 : i32
    return %arg0, %c0_i32 : i32, i32
  }
}

</mosaic_0001>

<bundles_post_ra>
// kernel: tpu_custom_call.1
= control target key start
LH: loop header
LB: loop body
LE: loop exit
PB: predicated region body
PF: predicated region fallthrough
CT: control target
= control target key end

     0   :  { %9 = vsyncpa [#allocation3], 0  ;;  %s554_s0 = inlined_call_operand.hbm [shape: f32[16,32], index: 0, kind: input, shape index: {}]   ;;  %s555_s1 = inlined_call_operand.hbm [shape: f32[16,32], index: 1, kind: input, shape index: {}]   ;;  %s556_s2 = inlined_call_operand.hbm [shape: f32[32,96], index: 2, kind: input, shape index: {}]   ;;  %s557_s3 = inlined_call_operand.vmem [shape: f32[1,96], index: 3, kind: input, shape index: {}]   ;;  %s558_s4 = inlined_call_operand.hbm [shape: f32[16,32], index: 4, kind: output, shape index: {}]  }
   0x1   :  { %10 = vsyncpa [#allocation6], 0 }
   0x2   :  { %11 = vsyncpa [#allocation4], 0  ;;  %s29_s17 = sshll.u32 %s555_s1, 4  ;;  %s475_s18 = smov [#allocation5]   ;;  %s30_s17 = int_to_ptr.hbm [resolvable:$true] %s29_s17 }
   0x3   :  { %s31_s19 = sshll.u32 %s475_s18, 4  ;;  %s16_s22 = sshll.u32 %s554_s0, 4  ;;  %s32_s19 = int_to_ptr.vmem [resolvable:$true] %s31_s19  ;;  %s17_s22 = int_to_ptr.hbm [resolvable:$true] %s16_s22 }
   0x4   :  { %s476_s23 = smov 128   ;;  %s477_s24 = smov 8  }
   0x5   :  { %37 = dma.hbm_to_vmem [thread:$0]  %s30_s17, 256, %s32_s19, [#allocation6], %s476_s23, %s476_s23, %s477_s24  }
   0x6   :  { %s478_s25 = smov [#allocation2]   ;;  %s42_s1 = sshll.u32 %s556_s2, 4  ;;  %s43_s1 = int_to_ptr.hbm [resolvable:$true] %s42_s1 }
   0x7   :  { %s18_s26 = sshll.u32 %s478_s25, 4  ;;  %s479_s0 = smov [#allocation7]   ;;  %s19_s26 = int_to_ptr.vmem [resolvable:$true] %s18_s26 }
   0x8   :  { %24 = dma.hbm_to_vmem [thread:$0]  %s17_s22, 256, %s19_s26, [#allocation3], %s476_s23, %s476_s23, %s477_s24  }
   0x9   :  { %s44_s29 = sshll.u32 %s479_s0, 4  ;;  %s45_s29 = int_to_ptr.vmem [resolvable:$true] %s44_s29 }
   0xa   :  { %50 = dma.hbm_to_vmem [thread:$0]  %s43_s1, 512, %s45_s29, [#allocation6], %s476_s23, %s476_s23, %s477_s24  }
   0xb   :  { %469 = dma.done.wait [#allocation3], 256  }
   0xc   :  { %470 = vsyncadd [#allocation3], 4294967040 }
   0xd   :  { %471 = dma.done.wait [#allocation6], 768  }
   0xe   :  { %472 = vsyncadd [#allocation6], 4294966528  ;;  %v71_v0 = vld [vmem:[#allocation7 + $0x10] sm:$0xff]  ;;  %v72_v1 = vld [vmem:[#allocation7 + $0x18] sm:$0xff]  ;;  %s480_s2 = smov 96   ;;  %vm77_vm0 = vcmask 261120  }
   0xf   :  { %v349_v2 = vpack.i.bf16 %v71_v0, %v72_v1  ;;  %96 = vmatpush.msra.mxu0 %v72_v1  ;;  %v69_v3 = vld [vmem:[#allocation7] sm:$0xff]  ;;  %v70_v4 = vld [vmem:[#allocation7 + $0x8] sm:$0xff]  ;;  %v67_v15 = vld [vmem:[#allocation5] sm:$0xff]  ;;  %vm209_vm1 = vcmask 64512   ;;  %s318_s9 = sshll.u32 %s558_s4, 4  ;;  %s319_s9 = int_to_ptr.hbm [resolvable:$true] %s318_s9 }
  0x10   :  { %v354_v5 = vpack.i.bf16 %v69_v3, %v70_v4  ;;  %v65_v6 = vld [vmem:[#allocation2] sm:$0xff]  ;;  %v66_v8 = vld [vmem:[#allocation2 + $0x8] sm:$0xff]  ;;  %v68_v16 = vld [vmem:[#allocation5 + $0x8] sm:$0xff] }
  0x11   :  { %350 = vrot.lane.b32.xlu0 %v349_v2, %s480_s2  ;;  %97 = vmatpush.msra.mxu0 %v71_v0  ;;  %v364_v7 = vld [vmem:[%s557_s3] ss:$0 sm:$0xff]  ;;  %s481_s3 = smov [#allocation8]  }
  0x12   :  { %123 = vrot.lane.b32.xlu1 %v364_v7, %s480_s2  ;;  %s316_s6 = sshll.u32 %s481_s3, 4  ;;  %s317_s6 = int_to_ptr.vmem [resolvable:$true] %s316_s6 }
  0x13   :  { %98 = vmatpush.msra.mxu0 %v70_v4 }
  0x15   :  { %99 = vmatpush.msra.mxu0 %v69_v3 }
  0x16   :  { %332 = vmatmul.msk.f32.vlgmr.msra.gmra.mxu0 %vm77_vm0, %v65_v6 }
  0x19   :  { %355 = vrot.lane.b32.xlu0 %v354_v5, %s480_s2 }
  0x1e   :  { %333 = vmatmul.msk.f32.gmra.mxu0 %vm77_vm0, %v66_v8 }
  0x83   :  { %v351_v9 = vpop.permute.xlu0 %350 }
  0x84   :  { %v352_v10 = vunpack.i.l.bf16 %v351_v9  ;;  %v353_v11 = vunpack.i.h.bf16 %v351_v9  ;;  %v124_v18 = vpop.permute.xlu1 %123 }
  0x86   :  { %144 = vmatpush.msra.mxu1 %v352_v10 }
  0x88   :  { %145 = vmatpush.msra.mxu1 %v353_v11 }
  0x8b   :  { %v356_v12 = vpop.permute.xlu0 %355 }
  0x8c   :  { %v357_v13 = vunpack.i.l.bf16 %v356_v12  ;;  %v358_v14 = vunpack.i.h.bf16 %v356_v12 }
  0x8e   :  { %146 = vmatpush.msra.mxu1 %v357_v13 }
  0x90   :  { %147 = vmatpush.msra.mxu1 %v358_v14 }
  0x91   :  { %334 = vmatmul.msk.f32.vlgmr.msra.gmra.mxu1 %vm77_vm0, %v67_v15 }
  0x93   :  { %v101_v17 = vpop.f32.mrf.mxu0 }
  0x94   :  { %v102_v21 = vadd.f32 %v364_v7, %v101_v17 }
  0x99   :  { %335 = vmatmul.msk.f32.gmra.mxu1 %vm77_vm0, %v68_v16 }
  0x9b   :  { %v104_v22 = vpop.f32.mrf.mxu0 }
  0x9c   :  { %v105_v25 = vadd.f32 %v364_v7, %v104_v22 }
 0x10e   :  { %v149_v19 = vpop.f32.mrf.mxu1 }
 0x10f   :  { %v150_v20 = vadd.f32 %v149_v19, %v124_v18 }
 0x111   :  { %336 = vmatpush.xpose.msk.msra.mxu2 %vm77_vm0, %v150_v20 }
 0x114   :  { %337 = vmatmul.msk.f32.vlgmr.msra.gmra.mxu2 %vm77_vm0, %v102_v21 }
 0x116   :  { %v152_v23 = vpop.f32.mrf.mxu1 }
 0x117   :  { %v153_v24 = vadd.f32 %v152_v23, %v124_v18 }
 0x119   :  { %v359_v26 = vpack.i.bf16 %v153_v24, %v150_v20  ;;  %338 = vmatpush.xpose.msk.msra.mxu3 %vm77_vm0, %v153_v24 }
 0x11c   :  { %339 = vmatmul.msk.f32.vlgmr.msra.gmra.mxu3 %vm77_vm0, %v105_v25 }
 0x197   :  { %v178_v27 = vpop.f32.mrf.mxu2 }
 0x198   :  { %v207_v28 = vmul.f32 0.17677669, %v178_v27 }
 0x19a   :  { %v210_v29 = vsel %vm209_vm1, %v207_v28, -inf }
 0x19b   :  { %211 = vmax.xlane.f32.xlu1 %v210_v29 }
 0x19f   :  { %v204_v30 = vpop.f32.mrf.mxu3 }
 0x1a0   :  { %v208_v31 = vmul.f32 0.17677669, %v204_v30 }
 0x1a2   :  { %v213_v32 = vsel %vm209_vm1, %v208_v31, -inf }
 0x1a3   :  { %214 = vmax.xlane.f32.xlu2 %v213_v32 }
 0x20e   :  { %v212_v33 = vpop.xlane.xlu1 %211 }
 0x20f   :  { %v216_v34 = vsub.f32 %v207_v28, %v212_v33 }
 0x211   :  { %v218_v35 = vmul.f32 1.442695, %v216_v34 }
 0x213   :  { %365 = vpow2.f32 %v218_v35 }
 0x216   :  { %v215_v36 = vpop.xlane.xlu2 %214 }
 0x217   :  { %v217_v37 = vsub.f32 %v208_v31, %v215_v36 }
 0x219   :  { %v366_v38 = vpop.eup %365  ;;  %v220_v39 = vmul.f32 1.442695, %v217_v37 }
 0x21a   :  { %v222_v40 = vsel %vm209_vm1, %v366_v38, 0.0 }
 0x21b   :  { %367 = vpow2.f32 %v220_v39  ;;  %223 = vadd.xlane.f32.xlu2 %v222_v40 }
 0x221   :  { %v368_v41 = vpop.eup %367 }
 0x222   :  { %v225_v42 = vsel %vm209_vm1, %v368_v41, 0.0 }
 0x223   :  { %226 = vadd.xlane.f32.xlu0 %v225_v42 }
 0x233   :  { %360 = vrot.lane.b32.xlu2 %v359_v26, %s480_s2 }
 0x28e   :  { %v224_v43 = vpop.xlane.xlu2 %223 }
 0x28f   :  { %369 = vrcp.f32 %v224_v43  ;;  %v239_v51 = vand.u32 2147483648, %v224_v43  ;;  %v237_v53 = vand.u32 2147483647, %v224_v43  ;;  %vm233_vm3 = vweird.f32 %v224_v43 }
 0x291   :  { %v240_v56 = vor.u32 1.1754944e-38, %v239_v51  ;;  %vm238_vm5 = vcmp.eq.f32.partialorder %v237_v53, 8.507059e+37 }
 0x295   :  { %v370_v44 = vpop.eup %369 }
 0x296   :  { %v229_v45 = vmul.f32 %v370_v44, %v224_v43  ;;  %v227_v46 = vpop.xlane.xlu0 %226  ;;  %v361_v47 = vpop.permute.xlu2 %360  ;;  %vm234_vm2 = vweird.f32 %v370_v44 }
 0x297   :  { %371 = vrcp.f32 %v227_v46  ;;  %v363_v49 = vunpack.i.h.bf16 %v361_v47  ;;  %v362_v50 = vunpack.i.l.bf16 %v361_v47  ;;  %vm235_vm4 = vmor %vm233_vm3, %vm234_vm2  ;;  %v254_v62 = vand.u32 2147483648, %v227_v46 }
 0x298   :  { %v230_v48 = vsub.f32 1.0, %v229_v45  ;;  %v252_v0 = vand.u32 2147483647, %v227_v46  ;;  %vm248_vm7 = vweird.f32 %v227_v46 }
 0x299   :  { %279 = vmatpush.msrb.mxu2 %v362_v50  ;;  %305 = vmatpush.msrb.mxu3 %v363_v49  ;;  %v255_v2 = vor.u32 1.1754944e-38, %v254_v62 }
 0x29a   :  { %v231_v52 = vmul.f32 %v370_v44, %v230_v48  ;;  %vm253_vm9 = vcmp.eq.f32.partialorder %v252_v0, 8.507059e+37 }
 0x29c   :  { %v232_v54 = vadd.f32 %v370_v44, %v231_v52 }
 0x29d   :  { %v372_v55 = vpop.eup %371 }
 0x29e   :  { %v244_v57 = vmul.f32 %v372_v55, %v227_v46  ;;  %v236_v58 = vsel %vm235_vm4, %v370_v44, %v232_v54  ;;  %vm249_vm6 = vweird.f32 %v372_v55 }
 0x29f   :  { %v241_v59 = vsel %vm238_vm5, %v240_v56, %v236_v58  ;;  %vm250_vm8 = vmor %vm248_vm7, %vm249_vm6 }
 0x2a0   :  { %v245_v60 = vsub.f32 1.0, %v244_v57  ;;  %v242_v61 = vmul.f32 %v366_v38, %v241_v59 }
 0x2a2   :  { %v246_v63 = vmul.f32 %v372_v55, %v245_v60  ;;  %340 = vmatmul.msk.f32.vlgmr.msrb.gmra.mxu2 %vm209_vm1, %v242_v61 }
 0x2a4   :  { %v247_v1 = vadd.f32 %v372_v55, %v246_v63 }
 0x2a6   :  { %v251_v3 = vsel %vm250_vm8, %v372_v55, %v247_v1 }
 0x2a7   :  { %v256_v4 = vsel %vm253_vm9, %v255_v2, %v251_v3 }
 0x2a8   :  { %v257_v5 = vmul.f32 %v368_v41, %v256_v4 }
 0x2aa   :  { %341 = vmatmul.msk.f32.vlgmr.msrb.gmra.mxu3 %vm209_vm1, %v257_v5 }
 0x325   :  { %v281_v6 = vpop.f32.mrf.mxu2 }
 0x326   :  { %310 = vst.msk [vmem:[#allocation8] sm:$0xff] %vm77_vm0, %v281_v6 }
 0x32d   :  { %v307_v7 = vpop.f32.mrf.mxu3 }
 0x32e   :  { %311 = vst.msk [vmem:[#allocation8 + $0x8] sm:$0xff] %vm77_vm0, %v307_v7 }
 0x32f   :  { %324 = dma.vmem_to_hbm [thread:$0]  %s317_s6, 256, %s319_s9, [#allocation4], %s476_s23, %s476_s23, %s477_s24  }
 0x330   :  { %473 = dma.done.wait [#allocation4], 256  }
 0x331   :  { %474 = vsyncadd [#allocation4], 4294967040 }
 0x332   :  { %329 = vsyncpa [#allocation3], 1 }
 0x333   :  { %330 = vsyncpa [#allocation6], 1 }
 0x334   :  { %331 = vsyncpa [#allocation4], 1 }

</bundles_post_ra>
